<compile_context>
chip_gen: v7x
topology: tpu7x:2x2x1
jax: 0.10.0
libtpu: 0.0.40
codegen_flags: <defaults>
</compile_context>

<pallas_src>
import jax
import jax.numpy as jnp
from jax.experimental import pallas as pl
from jax.experimental.pallas import tpu as pltpu


def biaffine_kernel(hq_ref, hkt_ref, w3_ref, kvec_ref, qvec_ref, c_ref, out_ref,
                    g_ref, qadd_ref):
    # Stage the query-side work once per (b, q) tile; reuse across key tiles.
    @pl.when(pl.program_id(2) == 0)
    def _():
        hq = hq_ref[...]                                          # (Sq, H) bf16
        g = jnp.dot(hq, w3_ref[...],
                    preferred_element_type=jnp.float32) + kvec_ref[...]
        g_ref[...] = g.astype(jnp.bfloat16)                       # (Sq, H)
        # Query-side additive term (broadcast over keys): VPU mul + lane reduce.
        qadd_ref[...] = jnp.sum(hq.astype(jnp.float32) * qvec_ref[...],
                                axis=-1, keepdims=True) + c_ref[0, 0]

    # Biaffine product against the raw (pre-transposed) keys: (Sq,H) @ (H,Sk).
    bi = jnp.dot(g_ref[...], hkt_ref[...],
                 preferred_element_type=jnp.float32)              # (Sq, Sk)
    z = bi + qadd_ref[...]
    # sigmoid(x) = 0.5 * tanh(0.5*x) + 0.5  -> single EUP op per element.
    out_ref[...] = (0.5 * jnp.tanh(0.5 * z) + 0.5).astype(out_ref.dtype)


def _round_up(x, m):
    return (x + m - 1) // m * m


def _vmem_capacity_bytes():
    try:
        cap = getattr(pltpu.get_tpu_info(), "vmem_capacity_bytes", None)
        if cap:
            return int(cap)
    except Exception:
        pass
    return 64 * 1024 * 1024   # conservative (v7x-sized) fallback


def _footprint(Sq, Sk, H, out_bytes):
    # Double-buffered pipeline blocks (hq, hk^T, out) + double-buffered constants
    # (W3, kvec, qvec) + scratch + in-kernel temporaries.
    blocks = 2 * (Sq * H * 2 + H * Sk * 2 + Sq * Sk * out_bytes)
    consts = 2 * (H * H * 2 + 2 * H * 4)
    scratch = Sq * H * 2 + Sq * 4
    temps = Sq * H * 8 + Sq * Sk * 6
    return blocks + consts + scratch + temps


def _pick_tiles(B, S, H, out_bytes, vmem_cap):
    S_padK = _round_up(S, 128)                 # key / lane dim -> lane-dense stores
    if S <= 512:
        Sq = _round_up(S, 8)                   # query / sublane dim: pad to 8 only
    else:
        Sq = 256
    S_padQ = _round_up(S, Sq)

    Sk = min(S_padK, 1024)                     # key tile (multiple of 128, divides S_padK)
    while S_padK % Sk:
        Sk -= 128

    budget = int(0.70 * vmem_cap)
    while _footprint(Sq, Sk, H, out_bytes) > budget and Sk > 128:
        Sk -= 128
        while S_padK % Sk:
            Sk -= 128
    while _footprint(Sq, Sk, H, out_bytes) > budget and Sq >= 16 and Sq % 16 == 0:
        Sq //= 2                               # still a multiple of 8, still divides S_padQ

    # Guarantee >= 2 grid steps so both v7x TensorCores get work.
    if B * (S_padQ // Sq) * (S_padK // Sk) == 1 and Sq >= 16 and Sq % 16 == 0:
        Sq //= 2

    return Sq, S_padQ, Sk, S_padK


def biaffine_tagger(hidden, params, out_dtype=jnp.float32):
    """hidden: (B, S, H) -> (B, S, S) out_dtype."""
    B, S, H = hidden.shape
    f32 = jnp.float32
    hi = jax.lax.Precision.HIGHEST

    ws_t = params["ws"].astype(f32).T               # (H, H): Ws^T  (Linear stores (out,in))
    we = params["we"].astype(f32)                   # (H, H): We
    bs = params["bs"].astype(f32).reshape(1, H)
    be_col = params["be"].astype(f32).reshape(H, 1)
    wbi = params["wbi"].astype(f32)
    wc = params["wc"].astype(f32)
    bc = params["bc"].astype(f32).reshape(1, 1)
    wcs = wc[:, :H].T                               # (H, 1) acts on hidden_start
    wce = wc[:, H:].T                               # (H, 1) acts on hidden_end

    # Fold both linear layers into the biaffine / concat weights (once, f32).
    wbi_we = jnp.dot(wbi, we, precision=hi)                          # (H, H)
    w3 = jnp.dot(ws_t, wbi_we, precision=hi)                         # (H, H)
    kvec = jnp.dot(bs, wbi_we, precision=hi)                         # (1, H)
    wbi_be = jnp.dot(wbi, be_col, precision=hi)                      # (H, 1)
    qvec = (jnp.dot(ws_t, wbi_be, precision=hi)
            + jnp.dot(ws_t, wcs, precision=hi)
            + jnp.dot(we.T, wce, precision=hi)).T                    # (1, H)
    c_all = (jnp.dot(bs, wbi_be, precision=hi)
             + jnp.dot(bs, wcs, precision=hi)
             + jnp.dot(be_col.T, wce, precision=hi) + bc)            # (1, 1)

    out_bytes = jnp.dtype(out_dtype).itemsize
    vmem_cap = _vmem_capacity_bytes()
    Sq, S_padQ, Sk, S_padK = _pick_tiles(B, S, H, out_bytes, vmem_cap)
    vmem_limit = int(min(vmem_cap * 3 // 4,
                         max(2 * _footprint(Sq, Sk, H, out_bytes), 32 * 1024 * 1024)))

    hid = hidden.astype(f32)
    hq_p = jnp.pad(hid, ((0, 0), (0, S_padQ - S), (0, 0))).astype(jnp.bfloat16)
    # Key operand pre-transposed: (B, H, S_padK) so the kernel never transposes.
    hkt_p = jnp.transpose(
        jnp.pad(hid, ((0, 0), (0, S_padK - S), (0, 0))).astype(jnp.bfloat16),
        (0, 2, 1))

    grid = (B, S_padQ // Sq, S_padK // Sk)
    const2 = lambda b, q, k: (0, 0)

    # TODO(synk): on VMEM-tight v7x shapes, single-buffer the constant W3/kvec/qvec
    # specs via pipeline_mode=pl.Buffered(1) once that path is validated.
    out_p = pl.pallas_call(
        biaffine_kernel,
        out_shape=jax.ShapeDtypeStruct((B, S_padQ, S_padK), out_dtype),
        grid_spec=pltpu.PrefetchScalarGridSpec(
            num_scalar_prefetch=0,
            grid=grid,
            in_specs=[
                pl.BlockSpec((None, Sq, H), lambda b, q, k: (b, q, 0)),   # hq (query rows)
                pl.BlockSpec((None, H, Sk), lambda b, q, k: (b, 0, k)),   # hk^T (key cols)
                pl.BlockSpec((H, H), const2),                             # W3 (bf16)
                pl.BlockSpec((1, H), const2),                             # kvec (f32)
                pl.BlockSpec((1, H), const2),                             # qvec (f32)
                pl.BlockSpec(memory_space=pltpu.MemorySpace.SMEM),        # c_all scalar
            ],
            out_specs=pl.BlockSpec((None, Sq, Sk), lambda b, q, k: (b, q, k)),
            scratch_shapes=[pltpu.VMEM((Sq, H), jnp.bfloat16),            # staged g
                            pltpu.VMEM((Sq, 1), jnp.float32)],            # staged q-add
        ),
        compiler_params=pltpu.CompilerParams(
            dimension_semantics=("parallel", "parallel", "arbitrary"),
            vmem_limit_bytes=vmem_limit),
    )(hq_p, hkt_p, w3.astype(jnp.bfloat16), kvec, qvec, c_all)

    if S_padQ == S and S_padK == S:
        return out_p
    # TODO(synk): callers that can mask padded rows/cols should consume out_p directly
    # (and/or pass out_dtype=bf16) to skip this extra S^2 HBM round trip.
    return out_p[:, :S, :S]


def reference(hidden, params):
    hs = hidden @ params["ws"].T + params["bs"]
    he = hidden @ params["we"].T + params["be"]
    bi = jnp.einsum("bsh,hk,btk->bst", hs, params["wbi"], he)
    cat = jnp.concatenate([hs, he], axis=-1)
    cc = cat @ params["wc"].T + params["bc"]          # (B, S, 1)
    return jax.nn.sigmoid(bi + cc)


def init_params(key, hidden_size):
    H = hidden_size
    ks = jax.random.split(key, 6)
    # orthogonal init for the biaffine weight (deterministic QR of a normal draw)
    q, _ = jnp.linalg.qr(jax.random.normal(ks[0], (H, H), jnp.float32))
    return {
        "ws": jax.random.normal(ks[1], (H, H), jnp.float32) * 0.1,      # start_fc.weight
        "bs": jax.random.normal(ks[2], (H,), jnp.float32) * 0.1,        # start_fc.bias
        "we": jax.random.normal(ks[3], (H, H), jnp.float32) * 0.1,      # end_fc.weight
        "be": jax.random.normal(ks[4], (H,), jnp.float32) * 0.1,        # end_fc.bias
        "wbi": q.astype(jnp.float32),                                   # biaffine_weight
        "wc": jax.random.normal(ks[5], (1, 2 * H), jnp.float32) * 0.1,  # concat_weight.weight
        "bc": jnp.zeros((1,), jnp.float32),                             # concat_weight.bias
    }


if __name__ == "__main__":
    key = jax.random.PRNGKey(0)
    k_h, k_p, k_h2, k_p2, k_h3, k_p3 = jax.random.split(key, 6)

    # Primary small-shape test (module-sized).
    B, S, H = 2, 8, 32
    hidden = jax.random.normal(k_h, (B, S, H), jnp.float32)
    params = init_params(k_p, H)
    out = jax.block_until_ready(biaffine_tagger(hidden, params))
    ref = reference(hidden, params)
    assert out.shape == (B, S, S)
    assert jnp.allclose(out, ref, atol=5e-2), "mismatch vs reference (small)"

    # Exercises asymmetric seq padding (query->8, key->128) and the output slice.
    B2, S2, H2 = 2, 300, 32
    hidden2 = jax.random.normal(k_h2, (B2, S2, H2), jnp.float32)
    params2 = init_params(k_p2, H2)
    out2 = jax.block_until_ready(biaffine_tagger(hidden2, params2))
    ref2 = reference(hidden2, params2)
    assert out2.shape == (B2, S2, S2)
    assert jnp.allclose(out2, ref2, atol=5e-2), "mismatch vs reference (padded)"

    # Exercises multi-tile query and key grid axes (staged-g reuse across k tiles).
    B3, S3, H3 = 2, 1100, 64
    hidden3 = jax.random.normal(k_h3, (B3, S3, H3), jnp.float32)
    params3 = init_params(k_p3, H3)
    out3 = jax.block_until_ready(biaffine_tagger(hidden3, params3))
    ref3 = reference(hidden3, params3)
    assert out3.shape == (B3, S3, S3)
    assert jnp.allclose(out3, ref3, atol=5e-2), "mismatch vs reference (tiled)"

    print("KERNEL_OK")
</pallas_src>

<mosaic_0001>
module attributes {stable_mosaic.version = 11 : i64} {
  func.func @biaffine_kernel(%arg0: i32, %arg1: i32, %arg2: i32, %arg3: memref<1x8x32xbf16, #tpu.memory_space<vmem>>, %arg4: memref<1x32x128xbf16, #tpu.memory_space<vmem>>, %arg5: memref<32x32xbf16, #tpu.memory_space<vmem>>, %arg6: memref<1x32xf32, #tpu.memory_space<vmem>>, %arg7: memref<1x32xf32, #tpu.memory_space<vmem>>, %arg8: memref<1x1xf32, #tpu.memory_space<smem>>, %arg9: memref<1x8x128xf32, #tpu.memory_space<vmem>>, %arg10: memref<8x32xbf16, #tpu.memory_space<vmem>>, %arg11: memref<8x1xf32, #tpu.memory_space<vmem>>) attributes {dimension_semantics = [#tpu.dimension_semantics<parallel>, #tpu.dimension_semantics<parallel>, #tpu.dimension_semantics<arbitrary>], iteration_bounds = array<i64: 2, 1, 1>, scalar_prefetch = 0 : i64, scratch_operands = 2 : i64, tpu.core_type = #tpu.core_type<tc>, window_params = [{transform_indices = @transform_0, window_bounds = array<i64: 1, 8, 32>}, {transform_indices = @transform_1, window_bounds = array<i64: 1, 32, 128>}, {pipeline_mode = #tpu.pipeline_mode<synchronous>, transform_indices = @transform_2, window_bounds = array<i64: 32, 32>}, {pipeline_mode = #tpu.pipeline_mode<synchronous>, transform_indices = @transform_3, window_bounds = array<i64: 1, 32>}, {pipeline_mode = #tpu.pipeline_mode<synchronous>, transform_indices = @transform_4, window_bounds = array<i64: 1, 32>}, {transform_indices = @transform_5, window_bounds = array<i64: 1, 1>}, {transform_indices = @transform_6, window_bounds = array<i64: 1, 8, 128>}]} {
    %c0_i32 = arith.constant 0 : i32
    %0 = arith.cmpi eq, %arg2, %c0_i32 : i32
    %1 = arith.extui %0 : i1 to i32
    %c0_i32_0 = arith.constant 0 : i32
    %2 = arith.cmpi ne, %1, %c0_i32_0 : i32
    scf.if %2 {
      %c0_13 = arith.constant 0 : index
      %c0_14 = arith.constant 0 : index
      %c0_15 = arith.constant 0 : index
      %20 = vector.load %arg3[%c0_13, %c0_14, %c0_15] : memref<1x8x32xbf16, #tpu.memory_space<vmem>>, vector<1x8x32xbf16>
      %21 = vector.shape_cast %20 : vector<1x8x32xbf16> to vector<8x32xbf16>
      %c0_16 = arith.constant 0 : index
      %c0_17 = arith.constant 0 : index
      %22 = vector.load %arg5[%c0_16, %c0_17] : memref<32x32xbf16, #tpu.memory_space<vmem>>, vector<32x32xbf16>
      %cst_18 = arith.constant dense<0.000000e+00> : vector<8x32xf32>
      %23 = tpu.matmul %21, %22, %cst_18 {dimension_numbers = #tpu.dot_dimension_numbers<[1], [0], [0], [1], [0, 0, 1, 1], [], []>} : vector<8x32xbf16>, vector<32x32xbf16>, vector<8x32xf32> -> vector<8x32xf32>
      %c0_19 = arith.constant 0 : index
      %c0_20 = arith.constant 0 : index
      %24 = vector.load %arg6[%c0_19, %c0_20] : memref<1x32xf32, #tpu.memory_space<vmem>>, vector<1x32xf32>
      %25 = vector.broadcast %24 : vector<1x32xf32> to vector<8x32xf32>
      %26 = arith.addf %23, %25 : vector<8x32xf32>
      %27 = arith.truncf %26 : vector<8x32xf32> to vector<8x32xbf16>
      %c0_21 = arith.constant 0 : index
      %c0_22 = arith.constant 0 : index
      %28 = vector.load %arg10[%c0_21, %c0_22] : memref<8x32xbf16, #tpu.memory_space<vmem>>, vector<8x32xbf16>
      tpu.vector_store %arg10[%c0_21, %c0_22], %27 {strides = array<i32>} : memref<8x32xbf16, #tpu.memory_space<vmem>>, vector<8x32xbf16>,
      %29 = arith.extf %21 : vector<8x32xbf16> to vector<8x32xf32>
      %c0_23 = arith.constant 0 : index
      %c0_24 = arith.constant 0 : index
      %30 = vector.load %arg7[%c0_23, %c0_24] : memref<1x32xf32, #tpu.memory_space<vmem>>, vector<1x32xf32>
      %31 = vector.broadcast %30 : vector<1x32xf32> to vector<8x32xf32>
      %32 = arith.mulf %29, %31 : vector<8x32xf32>
      %cst_25 = arith.constant dense<0.000000e+00> : vector<8xf32>
      %33 = vector.multi_reduction <add>, %32, %cst_25 [1] : vector<8x32xf32> to vector<8xf32>
      %34 = vector.shape_cast %33 : vector<8xf32> to vector<8x1xf32>
      %c0_26 = arith.constant 0 : index
      %c0_27 = arith.constant 0 : index
      %35 = memref.load %arg8[%c0_26, %c0_27] : memref<1x1xf32, #tpu.memory_space<smem>>
      %36 = vector.broadcast %35 : f32 to vector<8x1xf32>
      %37 = arith.addf %34, %36 : vector<8x1xf32>
      %c0_28 = arith.constant 0 : index
      %c0_29 = arith.constant 0 : index
      %38 = vector.load %arg11[%c0_28, %c0_29] : memref<8x1xf32, #tpu.memory_space<vmem>>, vector<8x1xf32>
      tpu.vector_store %arg11[%c0_28, %c0_29], %37 {strides = array<i32>} : memref<8x1xf32, #tpu.memory_space<vmem>>, vector<8x1xf32>,
    } else {
    }
    %c0 = arith.constant 0 : index
    %c0_1 = arith.constant 0 : index
    %3 = vector.load %arg10[%c0, %c0_1] : memref<8x32xbf16, #tpu.memory_space<vmem>>, vector<8x32xbf16>
    %c0_2 = arith.constant 0 : index
    %c0_3 = arith.constant 0 : index
    %c0_4 = arith.constant 0 : index
    %4 = vector.load %arg4[%c0_2, %c0_3, %c0_4] : memref<1x32x128xbf16, #tpu.memory_space<vmem>>, vector<1x32x128xbf16>
    %5 = vector.shape_cast %4 : vector<1x32x128xbf16> to vector<32x128xbf16>
    %cst = arith.constant dense<0.000000e+00> : vector<8x128xf32>
    %6 = tpu.matmul %3, %5, %cst {dimension_numbers = #tpu.dot_dimension_numbers<[1], [0], [0], [1], [0, 0, 1, 1], [], []>} : vector<8x32xbf16>, vector<32x128xbf16>, vector<8x128xf32> -> vector<8x128xf32>
    %c0_5 = arith.constant 0 : index
    %c0_6 = arith.constant 0 : index
    %7 = vector.load %arg11[%c0_5, %c0_6] : memref<8x1xf32, #tpu.memory_space<vmem>>, vector<8x1xf32>
    %8 = vector.broadcast %7 : vector<8x1xf32> to vector<8x128xf32>
    %9 = arith.addf %6, %8 : vector<8x128xf32>
    %cst_7 = arith.constant 5.000000e-01 : f32
    %10 = vector.broadcast %cst_7 : f32 to vector<8x128xf32>
    %11 = arith.mulf %10, %9 : vector<8x128xf32>
    %12 = math.tanh %11 : vector<8x128xf32>
    %cst_8 = arith.constant 5.000000e-01 : f32
    %13 = vector.broadcast %cst_8 : f32 to vector<8x128xf32>
    %14 = arith.mulf %13, %12 : vector<8x128xf32>
    %cst_9 = arith.constant 5.000000e-01 : f32
    %15 = vector.broadcast %cst_9 : f32 to vector<8x128xf32>
    %16 = arith.addf %14, %15 : vector<8x128xf32>
    %c0_10 = arith.constant 0 : index
    %c0_11 = arith.constant 0 : index
    %c0_12 = arith.constant 0 : index
    %17 = vector.load %arg9[%c0_10, %c0_11, %c0_12] : memref<1x8x128xf32, #tpu.memory_space<vmem>>, vector<1x8x128xf32>
    %18 = vector.shape_cast %17 : vector<1x8x128xf32> to vector<8x128xf32>
    %19 = vector.shape_cast %16 : vector<8x128xf32> to vector<1x8x128xf32>
    tpu.vector_store %arg9[%c0_10, %c0_11, %c0_12], %19 {strides = array<i32>} : memref<1x8x128xf32, #tpu.memory_space<vmem>>, vector<1x8x128xf32>,
    return
  }
  func.func @transform_0(%arg0: i32, %arg1: i32, %arg2: i32) -> (i32, i32, i32) {
    %c0_i32 = arith.constant 0 : i32
    %c0_i32_0 = arith.constant 0 : i32
    return %arg0, %arg1, %c0_i32 : i32, i32, i32
  }
  func.func @transform_1(%arg0: i32, %arg1: i32, %arg2: i32) -> (i32, i32, i32) {
    %c0_i32 = arith.constant 0 : i32
    %c0_i32_0 = arith.constant 0 : i32
    return %arg0, %c0_i32, %arg2 : i32, i32, i32
  }
  func.func @transform_2(%arg0: i32, %arg1: i32, %arg2: i32) -> (i32, i32) {
    %c0_i32 = arith.constant 0 : i32
    %c0_i32_0 = arith.constant 0 : i32
    %c0_i32_1 = arith.constant 0 : i32
    return %c0_i32, %c0_i32_0 : i32, i32
  }
  func.func @transform_3(%arg0: i32, %arg1: i32, %arg2: i32) -> (i32, i32) {
    %c0_i32 = arith.constant 0 : i32
    %c0_i32_0 = arith.constant 0 : i32
    %c0_i32_1 = arith.constant 0 : i32
    return %c0_i32, %c0_i32_0 : i32, i32
  }
  func.func @transform_4(%arg0: i32, %arg1: i32, %arg2: i32) -> (i32, i32) {
    %c0_i32 = arith.constant 0 : i32
    %c0_i32_0 = arith.constant 0 : i32
    %c0_i32_1 = arith.constant 0 : i32
    return %c0_i32, %c0_i32_0 : i32, i32
  }
  func.func @transform_5(%arg0: i32, %arg1: i32, %arg2: i32) -> (i32, i32) {
    %c0_i32 = arith.constant 0 : i32
    %c0_i32_0 = arith.constant 0 : i32
    %c0_i32_1 = arith.constant 0 : i32
    return %c0_i32, %c0_i32_0 : i32, i32
  }
  func.func @transform_6(%arg0: i32, %arg1: i32, %arg2: i32) -> (i32, i32, i32) {
    %c0_i32 = arith.constant 0 : i32
    return %arg0, %arg1, %arg2 : i32, i32, i32
  }
}

</mosaic_0001>

<bundles_post_ra>
// kernel: tpu_custom_call.1
= control target key start
LH: loop header
LB: loop body
LE: loop exit
PB: predicated region body
PF: predicated region fallthrough
CT: control target
= control target key end

     0   :  { %s1293_s0 = inlined_call_operand.hbm [shape: bf16[2,8,32], index: 0, kind: input, shape index: {}]   ;;  %s1294_s1 = inlined_call_operand.hbm [shape: bf16[2,32,128], index: 1, kind: input, shape index: {}]   ;;  %s1295_s2 = inlined_call_operand.hbm [shape: bf16[32,32], index: 2, kind: input, shape index: {}]   ;;  %s1296_s3 = inlined_call_operand.vmem [shape: f32[1,32], index: 3, kind: input, shape index: {}]   ;;  %s1297_s4 = inlined_call_operand.vmem [shape: f32[1,32], index: 4, kind: input, shape index: {}]   ;;  %s1298_s5 = inlined_call_operand.<no memory space> [shape: f32[1,1], index: 5, kind: input, shape index: {}]   ;;  %s1299_s6 = inlined_call_operand.hbm [shape: f32[2,8,128], index: 6, kind: output, shape index: {}]  }
   0x1   :  { %1306 = sst [smem:[#allocation17_spill]] %s1293_s0 }
   0x2   :  { %1307 = sst [smem:[#allocation18_spill]] %s1295_s2 }
   0x3   :  { %11 = sst [smem:[#allocation4]] %s1298_s5 }
   0x4   :  { %12 = vsyncpa [#allocation6], 0 }
   0x5   :  { %14 = vsyncpa [#allocation6 + $0x1], 0 }
   0x6   :  { %15 = vsyncpa [#allocation9], 0 }
   0x7   :  { %17 = vsyncpa [#allocation9 + $0x1], 0 }
   0x8   :  { %18 = vsyncpa [#allocation7], 0 }
   0x9   :  { %20 = vsyncpa [#allocation7 + $0x1], 0  ;;  %s1017_s23 = smov 0   ;;  %s1019_s24 = smov 0  }
   0xa   :  { %s1021_s25 = smov 0   ;;  %s1023_s26 = smov 0  }
   0xb   :  { %s1025_s27 = smov 0   ;;  %s1027_s28 = smov 0  }
   0xc LB: > { %s1048_s5 = sadd.s32 4294967295, %s968_s28   ;;  %s651_s29 = sadd.s32 4294967294, %s968_s28   ;;  %s968_s28 = sphi %s1027_s28, %s26_s28   ;;  %s964_s27 = sphi %s1025_s27, %s1333_s27   ;;  %s960_s26 = sphi %s1023_s26, %s1332_s26   ;;  %s956_s25 = sphi %s1021_s25, %s1331_s25   ;;  %s952_s24 = sphi %s1019_s24, %s1330_s24   ;;  %s948_s23 = sphi %s1017_s23, %s1329_s23  }
   0xd   : > { %p67_p0 = scmp.ne.s32.totalorder %s952_s24, %s948_s23  ;;  %p1300_p1 = scmp.eq.s32.totalorder %s1048_s5, 0 }
   0xe   : > { %p213_p3 = scmp.eq.s32.totalorder %s651_s29, 1  ;;  %p652_p5 = scmp.ge.s32.totalorder %s968_s28, 1 }
   0xf   : > { %p1057_p4 = por %p1300_p1, %p67_p0  ;;  %p220_p7 = scmp.lt.s32.totalorder %s968_s28, 3 }
  0x10   : > { %p1062_p6 = por %p213_p3, %p67_p0  ;;  %s970_s9 = smov [#allocation10]  }
  0x11   : > { %s1308_s30 = scalar_select %p1057_p4, 1, 0 }
  0x12   : > { %s1309_s7 = scalar_select %p1062_p6, 1, 0 }
  0x13   : > { %p1067_p8 = pnand %p652_p5, %p220_p7  ;;  %s232_s10 = sshll.u32 %s970_s9, 4  ;;  %s233_s10 = int_to_ptr.vmem [resolvable:$true] %s232_s10 }
  0x14   : > { %s45_s12 = sadd.s32 1, %s964_s27  ;;  %s1312_s2 = sld [smem:[#allocation18_spill]] }
  0x15   : > { %s1310_s8 = scalar_select %p1067_p8, 1, 0 }
  0x16   : > { %p710_p9 = pneg %p1067_p8 }
  0x18   : > { %p1076_p11 = pnand %p710_p9, %p1300_p1 }
  0x1a   : > { %s790_s15 = scalar_lea.hbm %s1312_s2, 256  ;;  %p792_p13 = pneg %p1076_p11 }
  0x1b   : > { %p791_p12 = scmp.ne.s32.totalorder %s1312_s2, %s790_s15  ;;  %p797_p5 = scmp.lt.u32.totalorder %s790_s15, %s1312_s2 }
  0x1d   : > { %p793_p0 = pnand %p792_p13, %p791_p12 }
  0x1f   : > { %p794_p3 = pneg %p793_p0 }
  0x21   : > { %p799_p7 = pnand %p797_p5, %p794_p3 }
  0x23   : > { %802 = shalt.err (!%p799_p7)
}
  0x24   : > { %s803_s20 = scalar_lea.vmem %s233_s10, 256  ;;  %p811_p2 = scmp.lt.s32.totalorder %s233_s10, %s233_s10 }
  0x25   : > { %p804_p9 = scmp.ne.s32.totalorder %s233_s10, %s803_s20  ;;  %p812_p6 = scmp.lt.s32.totalorder %s803_s20, %s803_s20 }
  0x27   : > { %p806_p10 = pnand %p804_p9, %p792_p13  ;;  %p813_p4 = por %p812_p6, %p811_p2 }
  0x29   : > { %p807_p1 = pneg %p806_p10 }
  0x2b   : > { %p814_p8 = pnand %p813_p4, %p807_p1 }
  0x2d   : > { %817 = shalt.err (!%p814_p8)
}
  0x2e   : > { %s1303_s21 = smov 64   ;;  %s1304_s22 = smov 4  }
  0x2f   : > { %713 = dma.hbm_to_vmem [thread:$0]  (!%p1076_p11), %s1312_s2, 256, %s233_s10, [#allocation9], %s1303_s21, %s1303_s21, %s1304_s22  }
  0x30   : > { %p47_p1 = scmp.ge.s32.totalorder %s45_s12, 2  ;;  %s54_s13 = sadd.s32 1, %s956_s25 }
  0x31   : > { %p61_p2 = scmp.ne.s32.totalorder %s956_s25, %s952_s24  ;;  %p62_p4 = scmp.eq.s32.totalorder %s968_s28, 0 }
  0x32   : > { %s1335_s12 = smov (%p47_p1, %s45_s12), 0  ;;  %p1315_p8 = scmp.eq.s32.totalorder %s1048_s5, 1 }
  0x33   : > { %1313 = sst [smem:[#allocation16_spill]] %s1335_s12  ;;  %p1106_p6 = por %p62_p4, %p61_p2 }
  0x34   : > { %p1112_p10 = por %p1315_p8, %p61_p2  ;;  %s49_s15 = ssub.s32 %s964_s27, %s1335_s12 }
  0x35   : > { %p726_p11 = scmp.lt.s32.totalorder %s968_s28, 2  ;;  %p52_p12 = scmp.eq.s32.totalorder %s49_s15, 0 }
  0x36   : > { %s1120_s10 = sand.u32 1, %s956_s25   ;;  %s656_s18 = sshll.u32 %s964_s27, 6 }
  0x37   : > { %s655_s16 = sshll.u32 %s1120_s10, 2  ;;  %s1317_s0 = sld [smem:[#allocation17_spill]] }
  0x38   : > { %s1124_s17 = scalar_select %p52_p12, %s956_s25, %s54_s13  }
  0x39   : > { %s259_s9 = scalar_lea.vmem [#allocation5], %s655_s16  ;;  %p1136_p13 = pnand %p726_p11, %p1106_p6 }
  0x3a   : > { %s267_s15 = sshll.u32 %s259_s9, 4  ;;  %s657_s13 = sshll.u32 %s1120_s10, 4  ;;  %s1132_s15 = int_to_ptr.vmem [resolvable:$true] %s267_s15 }
  0x3b   : > { %s256_s19 = scalar_lea.sflag [#allocation6], %s1120_s10  ;;  %p820_p3 = pneg %p1136_p13 }
  0x3d   : > { %s1130_s29 = scalar_lea.hbm %s1317_s0, %s656_s18  ;;  %s823_s14 = scalar_lea.hbm %s1317_s0, 128 }
  0x3e   : > { %s818_s18 = scalar_lea.hbm %s1130_s29, 64  ;;  %p824_p9 = scmp.lt.u32.totalorder %s1130_s29, %s1317_s0 }
  0x3f   : > { %p819_p0 = scmp.ne.s32.totalorder %s1130_s29, %s818_s18  ;;  %p825_p1 = scmp.lt.u32.totalorder %s823_s14, %s818_s18 }
  0x40   : > { %p827_p4 = scmp.lt.u32.totalorder %s818_s18, %s1130_s29 }
  0x41   : > { %p821_p5 = pnand %p820_p3, %p819_p0  ;;  %p826_p2 = por %p825_p1, %p824_p9 }
  0x43   : > { %p822_p7 = pneg %p821_p5  ;;  %p828_p6 = por %p827_p4, %p826_p2 }
  0x45   : > { %p829_p8 = pnand %p828_p6, %p822_p7 }
  0x47   : > { %832 = shalt.err (!%p829_p8)
}
  0x48   : > { %s833_s22 = scalar_lea.vmem %s1132_s15, 64  ;;  %s973_s16 = smov [#allocation5]  }
  0x49   : > { %p834_p11 = scmp.ne.s32.totalorder %s1132_s15, %s833_s22  ;;  %s838_s20 = sshll.u32 %s973_s16, 4  ;;  %s839_s20 = int_to_ptr.vmem [resolvable:$false] %s838_s20 }
  0x4a   : > { %s840_s2 = scalar_lea.vmem %s839_s20, 128  ;;  %p841_p5 = scmp.lt.s32.totalorder %s1132_s15, %s839_s20 }
  0x4b   : > { %p836_p12 = pnand %p834_p11, %p820_p3  ;;  %p842_p9 = scmp.lt.s32.totalorder %s840_s2, %s833_s22 }
  0x4d   : > { %p837_p0 = pneg %p836_p12  ;;  %p843_p1 = por %p842_p9, %p841_p5 }
  0x4f   : > { %p844_p2 = pnand %p843_p1, %p837_p0 }
  0x51   : > { %847 = shalt.err (!%p844_p2)
}
  0x52   : > { %717 = dma.hbm_to_vmem [thread:$0]  (!%p1136_p13), %s1130_s29, 64, %s1132_s15, %s256_s19  }
  0x53   : > { %s278_s18 = scalar_lea.vmem [#allocation8], %s657_s13  ;;  %s274_s9 = sand.u32 1, %s968_s28  }
  0x54   : > { %s286_s14 = sshll.u32 %s278_s18, 4  ;;  %s1319_s16 = sshll.u32 %s964_s27, 8  ;;  %s1171_s14 = int_to_ptr.vmem [resolvable:$true] %s286_s14 }
  0x55   : > { %s1178_s2 = scalar_lea.hbm %s1294_s1, %s1319_s16  ;;  %s1180_s0 = scalar_lea.sflag [#allocation9], %s274_s9 }
  0x56   : > { %s848_s12 = scalar_lea.hbm %s1178_s2, 256  ;;  %s853_s15 = scalar_lea.hbm %s1294_s1, 512 }
  0x57   : > { %p849_p7 = scmp.ne.s32.totalorder %s1178_s2, %s848_s12  ;;  %p854_p8 = scmp.lt.u32.totalorder %s1178_s2, %s1294_s1 }
  0x58   : > { %p855_p11 = scmp.lt.u32.totalorder %s853_s15, %s848_s12  ;;  %p857_p0 = scmp.lt.u32.totalorder %s848_s12, %s1178_s2 }
  0x59   : > { %p851_p4 = pnand %p849_p7, %p820_p3 }
  0x5a   : > { %p856_p12 = por %p855_p11, %p854_p8 }
  0x5b   : > { %p852_p6 = pneg %p851_p4 }
  0x5c   : > { %p858_p5 = por %p857_p0, %p856_p12 }
  0x5e   : > { %p859_p9 = pnand %p858_p5, %p852_p6 }
  0x60   : > { %862 = shalt.err (!%p859_p9)
}
  0x61   : > { %s863_s18 = scalar_lea.vmem %s1171_s14, 256  ;;  %s974_s9 = smov [#allocation8]  }
  0x62   : > { %p864_p1 = scmp.ne.s32.totalorder %s1171_s14, %s863_s18  ;;  %s868_s16 = sshll.u32 %s974_s9, 4  ;;  %s869_s16 = int_to_ptr.vmem [resolvable:$false] %s868_s16 }
  0x63   : > { %s870_s22 = scalar_lea.vmem %s869_s16, 512  ;;  %p871_p4 = scmp.lt.s32.totalorder %s1171_s14, %s869_s16 }
  0x64   : > { %p866_p2 = pnand %p864_p1, %p820_p3  ;;  %p872_p8 = scmp.lt.s32.totalorder %s870_s22, %s863_s18 }
  0x66   : > { %p867_p7 = pneg %p866_p2  ;;  %p873_p11 = por %p872_p8, %p871_p4 }
  0x68   : > { %p874_p12 = pnand %p873_p11, %p867_p7 }
  0x6a   : > { %877 = shalt.err (!%p874_p12)
}
  0x6b   : > { %s1320_s12 = smov 4   ;;  %s1321_s20 = smov 64  }
  0x6c   : > { %720 = dma.hbm_to_vmem [thread:$0]  (!%p1136_p13), %s1178_s2, 256, %s1171_s14, %s1180_s0, %s1321_s20, %s1321_s20, %s1320_s12  }
  0x6d   : > { %p1322_p3 = scmp.ne.s32.totalorder %s1310_s8, 0 }
  0x6e   : > { %s1212_s10 = sand.u32 (!%p1322_p3), 1, %s952_s24   ;;  %p1323_p6 = scmp.ne.s32.totalorder (!%p1322_p3), %s1308_s30, 0 }
  0x6f   : > { %298 = sbr.rel (%p1322_p3) target bundleno = 604 (0x25c), region = 44  ;;  %s661_s29 = sshll.u32 (!%p1322_p3), %s1212_s10, 2 }
  0x70   : > { %s301_s15 = scalar_lea.sflag (!%p1322_p3), [#allocation6], %s1212_s10  ;;  %s304_s13 = scalar_lea.vmem (!%p1322_p3), [#allocation5], %s661_s29 }
  0x76   : > { %931 = dma.done.wait (%p1323_p6), %s301_s15, 64  }
  0x77   : > { %933 = vsyncadd (%p1323_p6), %s301_s15, 4294967232  ;;  %s309_s0 = sand.u32 1, %s1048_s5   ;;  %s662_s8 = sshll.u32 %s1212_s10, 4 }
  0x78   : > { %s310_s21 = scalar_lea.sflag [#allocation9], %s309_s0  ;;  %s313_s14 = scalar_lea.vmem [#allocation8], %s662_s8 }
  0x79   : > { %935 = dma.done.wait (%p1323_p6), %s310_s21, 256  }
  0x7a   : > { %937 = vsyncadd (%p1323_p6), %s310_s21, 4294967040  ;;  %p1324_p13 = scmp.eq.s32.totalorder %s1048_s5, 0 }
  0x7c   : > { %939 = dma.done.wait (%p1324_p13), [#allocation9], 256   ;;  %p1325_p0 = pmov %p1324_p13 }
  0x7d   : > { %v975_v0 = vmov 0.0   ;;  %vm976_vm0 = vmmov 0   ;;  %v784_v1 = vld [vmem:[#allocation10] sm:$0xff]   ;;  %v785_v2 = vld [vmem:[#allocation10 + $0x8] sm:$0xff]   ;;  %v356_v3 = vld [vmem:[%s304_s13] sm:$0xf] }
  0x7e   : > { %941 = vsyncadd (%p1325_p0), [#allocation9], 4294967040  ;;  %684 = vmatprep.subr.bf16.mxu0 %v975_v0  ;;  %688 = vmatprep.mubr.msk.bf16.mxu0 %vm976_vm0, %v975_v0  ;;  %v669_v4 = vld [vmem:[%s1297_s4] ss:$0 sm:$0xff]  ;;  %v427_v5 = vunpack.c.l.bf16 %v356_v3  ;;  %vm380_vm1 = vcmask 261120   ;;  %v786_v8 = vld [vmem:[%s313_s14] sm:$0xff]  }
  0x7f   : > { %692 = vmatprep.subr.bf16.mxu1 %v975_v0  ;;  %696 = vmatprep.mubr.msk.bf16.mxu1 %vm976_vm0, %v975_v0  ;;  %v787_v9 = vld [vmem:[%s313_s14 + $0x8] sm:$0xff]   ;;  %v977_v10 = vmov 0   ;;  %s439_s5 = sld [smem:[#allocation4]]  ;;  %vm442_vm2 = vcmask 7168   ;;  %vm425_vm3 = vcmask 257024   ;;  %s664_s9 = sshll.u32 %s1212_s10, 3 }
  0x80   : > { %685 = vmatpush3.bf16.msra.mxu0 %v784_v1  ;;  %v435_v6 = vmul.f32 %v669_v4, %v427_v5  ;;  %693 = vmatpush3.bf16.msra.mxu1 %v786_v8  ;;  %v665_v15 = vld [vmem:[%s1296_s3] ss:$0 sm:$0xff]  ;;  %s674_s16 = sshll.u32 %s960_s26, 7  ;;  %s350_s22 = scalar_lea.vmem [#allocation11], %s664_s9 }
  0x81   : > { %686 = vmatprep.subr.bf16.mxu0 %v975_v0  ;;  %694 = vmatprep.subr.bf16.mxu1 %v975_v0  ;;  %s532_s12 = sshll.u32 %s350_s22, 4  ;;  %s1244_s15 = scalar_lea.hbm %s1299_s6, %s674_s16  ;;  %s1246_s12 = int_to_ptr.vmem [resolvable:$true] %s532_s12 }
  0x82   : > { %v436_v7 = vsel %vm380_vm1, %v435_v6, 0.0  ;;  %783 = vset.pattern.permute.xlu0 %v977_v10  ;;  %s517_s13 = scalar_lea.sflag [#allocation7], %s1212_s10  ;;  %s878_s0 = scalar_lea.vmem %s1246_s12, 128 }
  0x83   : > { %437 = vadd.xlane.f32.xlu0 %v436_v7  ;;  %p879_p5 = scmp.ne.s32.totalorder %s1246_s12, %s878_s0  ;;  %s978_s26 = smov [#allocation11]  }
  0x84   : > { %687 = vmatpush3.bf16.msra.mxu0 %v785_v2  ;;  %695 = vmatpush3.bf16.msra.mxu1 %v787_v9  ;;  %s882_s8 = sshll.u32 %s978_s26, 4  ;;  %s883_s8 = int_to_ptr.vmem [resolvable:$false] %s882_s8 }
  0x85   : > { %v440_v11 = vstv %s439_s5  ;;  %p880_p9 = pnand %p879_p5, %p1112_p10  ;;  %s884_s21 = scalar_lea.vmem %s883_s8, 256 }
  0x86   : > { %p885_p2 = scmp.lt.s32.totalorder %s1246_s12, %s883_s8  ;;  %p886_p7 = scmp.lt.s32.totalorder %s884_s21, %s878_s0 }
  0x87   : > { %689 = vmatmul.mubr.msk.bf16.vlgmr.msra.gmra.mrb[0].mxu0 %vm380_vm1, %v356_v3  ;;  %p881_p1 = pneg %p880_p9 }
  0x88   : > { %p887_p4 = por %p886_p7, %p885_p2 }
  0x8a   : > { %p888_p8 = pnand %p887_p4, %p881_p1 }
 0x110   : > { %v438_v12 = vpop.xlane.xlu0 %437 }
 0x111   : > { %v441_v13 = vadd.f32 %v440_v11, %v438_v12 }
 0x113   : > { %443 = vst.msk [vmem:[#allocation3] sm:$0xff] %vm442_vm2, %v441_v13 }
 0x11a   : > { %v449_v14 = vld [vmem:[#allocation3] sm:$0xff] }
 0x11b   : > { %452 = vperm.xlu0 %783, %v449_v14  }
 0x15a   : > { %v418_v16 = vpop.f32.mrb[0].mxu0 }
 0x15b   : > { %v419_v17 = vadd.f32 %v665_v15, %v418_v16  ;;  %v690_v18 = vpop.f32.mrb[1].mxu0 }
 0x15c   : > { %v421_v19 = vpop.f32.mrb[2].mxu0 }
 0x15d   : > { %v424_v20 = vpack.c.bf16 %v419_v17, %v419_v17  ;;  %v691_v21 = vpop.f32.mrb[3].mxu0 }
 0x15f   : > { %426 = vst.msk [vmem:[#allocation2] sm:$0xf] %vm425_vm3, %v424_v20 }
 0x166   : > { %v444_v22 = vld [vmem:[#allocation2] sm:$0xf] }
 0x167   : > { %697 = vmatmul.mubr.msk.bf16.vlgmr.msra.gmra.mrb[0].mxu1 %vm380_vm1, %v444_v22 }
 0x19a   : > { %v453_v23 = vpop.permute.xlu0 %452 }
 0x23a   : > { %v505_v24 = vpop.f32.mrb[0].mxu1 }
 0x23b   : > { %v506_v25 = vadd.f32 %v505_v24, %v453_v23  ;;  %v698_v26 = vpop.f32.mrb[1].mxu1 }
 0x23c   : > { %v508_v27 = vpop.f32.mrb[2].mxu1 }
 0x23d   : > { %v511_v28 = vmul.f32 0.5, %v506_v25  ;;  %v699_v29 = vpop.f32.mrb[3].mxu1 }
 0x23f   : > { %788 = vtanh.f32 %v511_v28 }
 0x249   : > { %v789_v30 = vpop.eup %788 }
 0x24a   : > { %v513_v31 = vmul.f32 0.5, %v789_v30 }
 0x24c   : > { %v514_v32 = vadd.f32 0.5, %v513_v31 }
 0x24e   : > { %515 = vst [vmem:[%s350_s22] sm:$0xff] %v514_v32 }
 0x24f   : > { %891 = shalt.err (!%p888_p8)
}
 0x250   : > { %s892_s10 = scalar_lea.hbm %s1244_s15, 128  ;;  %s896_s19 = scalar_lea.hbm %s1299_s6, 256 }
 0x251   : > { %p893_p11 = scmp.ne.s32.totalorder %s1244_s15, %s892_s10  ;;  %p897_p6 = scmp.lt.u32.totalorder %s1244_s15, %s1299_s6 }
 0x252   : > { %p898_p13 = scmp.lt.u32.totalorder %s896_s19, %s892_s10  ;;  %p900_p5 = scmp.lt.u32.totalorder %s892_s10, %s1244_s15 }
 0x253   : > { %p894_p12 = pnand %p893_p11, %p1112_p10 }
 0x254   : > { %p899_p0 = por %p898_p13, %p897_p6 }
 0x255   : > { %p895_p3 = pneg %p894_p12 }
 0x256   : > { %p901_p9 = por %p900_p5, %p899_p0 }
 0x258   : > { %p902_p1 = pnand %p901_p9, %p895_p3 }
 0x25a   : > { %905 = shalt.err (!%p902_p1)
}
 0x25b   : > { %708 = dma.vmem_to_hbm [thread:$0]  (%p1112_p10), %s1246_s12, 128, %s1244_s15, %s517_s13  }
 0x25c PF: > { %s544_s18 = sand.u32 1, %s948_s23   ;;  %p1326_p2 = scmp.ne.s32.totalorder %s1309_s7, 0 }
 0x25d   : > { %p1327_p7 = scmp.ge.s32.totalorder %s968_s28, 2  ;;  %s545_s9 = scalar_lea.sflag [#allocation7], %s544_s18 }
 0x25f   : > { %p722_p4 = pnand %p1327_p7, %p1326_p2 }
 0x261   : > { %943 = dma.done.wait (!%p722_p4), %s545_s9, 128  }
 0x262   : > { %945 = vsyncadd (!%p722_p4), %s545_s9, 4294967168  ;;  %s26_s28 = sadd.s32 1, %s968_s28   ;;  %s1328_s11 = sld [smem:[#allocation16_spill]] }
 0x263   : > { %p23_p8 = scmp.ge.s32.totalorder %s26_s28, 4   ;;  %s1329_s23 = smov %s952_s24 }
 0x264   : > { %s1330_s24 = smov %s956_s25  ;;  %s1331_s25 = smov %s1124_s17 }
 0x265   : > { %s1332_s26 = smov %s964_s27  ;;  %25 = sbr.rel (!%p23_p8) target bundleno = 12 (0xc), region = 110 }
 0x268   : > { %s1333_s27 = smov %s1328_s11 }
 0x26c   :  { %550 = vsyncpa [#allocation6], 1 }
 0x26d   :  { %552 = vsyncpa [#allocation6 + $0x1], 1 }
 0x26e   :  { %553 = vsyncpa [#allocation9], 1 }
 0x26f   :  { %555 = vsyncpa [#allocation9 + $0x1], 1 }
 0x270   :  { %556 = vsyncpa [#allocation7], 1 }
 0x271   :  { %558 = vsyncpa [#allocation7 + $0x1], 1 }

</bundles_post_ra>
